<compile_context>
chip_gen: v5e
topology: v5e:2x2
jax: 0.10.0
libtpu: 0.0.40
codegen_flags: <defaults>
</compile_context>

<pallas_src>
import functools

import jax
import jax.numpy as jnp
from jax import lax
from jax.experimental import pallas as pl
from jax.experimental.pallas import tpu as pltpu

_EPS = 1e-6  # torch.nn.PairwiseDistance default eps (added to the difference)


def _pairwise_sq_dist(x, y):
    """||x_i - y_j + eps||^2 via the MXU decomposition.

    sum_d (x_id - y_jd + eps)^2
      = sum_d (x_id^2 + 2*eps*x_id)            (row term, depends on i)
      + sum_d (y_jd^2 - 2*eps*y_jd)            (col term, depends on j)
      - 2 * sum_d x_id * y_jd                  (MXU matmul)
      + D * eps^2
    """
    d = x.shape[1]
    row = jnp.sum(x * x + (2.0 * _EPS) * x, axis=1, keepdims=True)       # (N, 1)
    # Column term laid out along lanes via a ones(1,D) matvec (avoids an
    # explicit (M,1)->(1,M) relayout).
    ones_row = jnp.ones((1, d), dtype=jnp.float32)
    col = lax.dot_general(ones_row, y * y - (2.0 * _EPS) * y,
                          (((1,), (1,)), ((), ())),
                          preferred_element_type=jnp.float32)            # (1, M)
    xy = lax.dot_general(x, y, (((1,), (1,)), ((), ())),
                         preferred_element_type=jnp.float32)             # (N, M)
    return row + col - 2.0 * xy + d * (_EPS * _EPS)


def _full_reduce(x, op):
    # Two single-axis reductions (robust Mosaic lowering), result shape (1, 1).
    return op(op(x, axis=1, keepdims=True), axis=0, keepdims=True)


def _matvec_fns(n, m):
    """K^T u and K v.  MXU only pays off above ~128x128; below that the
    push/pop latency dominates, so use the VPU mul + reduce path."""
    if n * m >= 128 * 128:
        def kt_u(kmat, u):    # (N,M),(N,1) -> (1,M)
            return lax.dot_general(u, kmat, (((0,), (0,)), ((), ())),
                                   preferred_element_type=jnp.float32)

        def k_v(kmat, v):     # (N,M),(1,M) -> (N,1)
            return lax.dot_general(kmat, v, (((1,), (1,)), ((), ())),
                                   preferred_element_type=jnp.float32)
    else:
        def kt_u(kmat, u):
            return jnp.sum(kmat * u, axis=0, keepdims=True)

        def k_v(kmat, v):
            return jnp.sum(kmat * v, axis=1, keepdims=True)
    return kt_u, k_v


def _triplet_wasserstein_kernel(ratio_ref, anchor_ref, pos_ref, neg_ref,
                                loss_ref, dp_ref, dn_ref,
                                *, reg, margin, normalize, cutoff, n_iters,
                                unroll):
    anchor = anchor_ref[...]
    pos = pos_ref[...]
    neg = neg_ref[...]

    n = anchor.shape[0]
    m_p = pos.shape[0]
    m_n = neg.shape[0]

    cost_p = _pairwise_sq_dist(anchor, pos)                 # (N, Mp)
    cost_n = _pairwise_sq_dist(anchor, neg)                 # (N, Mn)

    # Max-normalisation folded into the exp scale and the final scalar:
    #   sinkhorn(cost / max) uses K = exp(-cost/(reg*max)), and
    #   sum(T * cost/max) == sum(T * cost) / max.
    if normalize:
        inv_max_p = 1.0 / _full_reduce(cost_p, jnp.max)     # (1, 1)
        inv_max_n = 1.0 / _full_reduce(cost_n, jnp.max)     # (1, 1)
    else:
        inv_max_p = jnp.ones((1, 1), jnp.float32)
        inv_max_n = jnp.ones((1, 1), jnp.float32)

    # TODO(synk): exp(-cost/reg) can underflow to 0 for unnormalised costs or
    # very small reg (K^T u -> 0 -> inf); a log-domain Sinkhorn would be needed
    # there.  PyTorch builds the cost matrix in float64 and uses the
    # convergence-thresholded ot.gpu.sinkhorn; here it is float32 with a fixed
    # number of iterations.
    k_p = jnp.exp(cost_p * (inv_max_p * (-1.0 / reg)))
    k_n = jnp.exp(cost_n * (inv_max_n * (-1.0 / reg)))

    a = 1.0 / n
    b_p = 1.0 / m_p
    b_n = 1.0 / m_n

    ktu_p_fn, kv_p_fn = _matvec_fns(n, m_p)
    ktu_n_fn, kv_n_fn = _matvec_fns(n, m_n)

    def one_step(carry):
        # Two independent Sinkhorn chains interleaved: each update is a short
        # serial mul -> reduce -> divide chain, so interleaving the positive
        # and negative pairs roughly doubles slot occupancy on one TensorCore.
        u_p, v_p, u_n, v_n = carry
        ktu_p = ktu_p_fn(k_p, u_p)
        ktu_n = ktu_n_fn(k_n, u_n)
        v_p = b_p / ktu_p
        v_n = b_n / ktu_n
        kv_p = kv_p_fn(k_p, v_p)
        kv_n = kv_n_fn(k_n, v_n)
        u_p = a / kv_p
        u_n = a / kv_n
        return (u_p, v_p, u_n, v_n)

    def body(_, carry):
        for _ in range(unroll):       # manual unroll -> scheduler visibility
            carry = one_step(carry)
        return carry

    init = (jnp.full((n, 1), a, dtype=jnp.float32),
            jnp.full((1, m_p), b_p, dtype=jnp.float32),
            jnp.full((n, 1), a, dtype=jnp.float32),
            jnp.full((1, m_n), b_n, dtype=jnp.float32))
    carry = lax.fori_loop(0, n_iters // unroll, body, init)
    for _ in range(n_iters % unroll):
        carry = one_step(carry)
    u_p, v_p, u_n, v_n = carry

    # distance = sum(diag(u) K diag(v) * cost_norm) = sum(u*K*v*cost) / max
    dp = _full_reduce(u_p * k_p * v_p * cost_p, jnp.sum) * inv_max_p
    dn = _full_reduce(u_n * k_n * v_n * cost_n, jnp.sum) * inv_max_n

    if cutoff == "leaky":
        z = dp - dn + margin
        losses = jnp.where(z > 0, z, 0.01 * z)
    elif cutoff == "relu":
        losses = jnp.maximum(dp - dn + margin, 0.0)
    else:  # default path of the PyTorch module (cutoff=None)
        ratio = ratio_ref[0]
        losses = dp - ratio * dn
    loss_ref[...] = losses
    dp_ref[...] = dp
    dn_ref[...] = dn


def triplet_wasserstein_loss(anchor, positive, negative, new_ratio,
                             *, margin=1.0, entropy_reg=0.1,
                             normalize_cost=True, cutoff=None, n_iters=100,
                             unroll=4):
    anchor = jnp.asarray(anchor, jnp.float32)
    positive = jnp.asarray(positive, jnp.float32)
    negative = jnp.asarray(negative, jnp.float32)
    ratio = jnp.asarray([new_ratio], dtype=jnp.float32)
    kernel = functools.partial(
        _triplet_wasserstein_kernel, reg=float(entropy_reg),
        margin=float(margin), normalize=bool(normalize_cost),
        cutoff=cutoff, n_iters=int(n_iters), unroll=int(unroll))
    scalar = jax.ShapeDtypeStruct((1, 1), jnp.float32)
    # NOTE: for large N/M/D set pltpu.CompilerParams(vmem_limit_bytes=...) and
    # tile the cost-matrix build over a grid; at these sizes it is unnecessary.
    loss, dp, dn = pl.pallas_call(
        kernel,
        out_shape=(scalar, scalar, scalar),
        in_specs=[
            pl.BlockSpec(memory_space=pltpu.MemorySpace.SMEM),   # ratio scalar
            pl.BlockSpec(memory_space=pltpu.MemorySpace.VMEM),   # anchor
            pl.BlockSpec(memory_space=pltpu.MemorySpace.VMEM),   # positive
            pl.BlockSpec(memory_space=pltpu.MemorySpace.VMEM),   # negative
        ],
        out_specs=(
            pl.BlockSpec(memory_space=pltpu.MemorySpace.VMEM),
            pl.BlockSpec(memory_space=pltpu.MemorySpace.VMEM),
            pl.BlockSpec(memory_space=pltpu.MemorySpace.VMEM),
        ),
    )(ratio, anchor, positive, negative)
    return loss[0, 0], dp[0, 0], dn[0, 0]


def _reference(anchor, positive, negative, new_ratio, *, entropy_reg=0.1,
               normalize_cost=True, n_iters=100):
    """Pure-JAX reference of the same algorithm (for a correctness check)."""
    def wsd(x, y):
        diff = x[:, None, :] - y[None, :, :] + _EPS
        cost = jnp.sum(diff * diff, axis=-1)
        if normalize_cost:
            cost = cost / jnp.max(cost)
        kmat = jnp.exp(-cost / entropy_reg)
        n, m = cost.shape
        u0 = jnp.full((n,), 1.0 / n)
        v0 = jnp.full((m,), 1.0 / m)

        def body(_, carry):
            u, v = carry
            v = (1.0 / m) / (kmat.T @ u)
            u = (1.0 / n) / (kmat @ v)
            return (u, v)

        u, v = lax.fori_loop(0, n_iters, body, (u0, v0))
        transport = u[:, None] * kmat * v[None, :]
        return jnp.sum(transport * cost)

    dp = wsd(anchor, positive)
    dn = wsd(anchor, negative)
    return dp - new_ratio * dn, dp, dn


if __name__ == "__main__":
    key = jax.random.PRNGKey(0)
    k1, k2, k3 = jax.random.split(key, 3)
    n_samples, feat = 8, 32
    anchor = jax.random.normal(k1, (n_samples, feat), dtype=jnp.float32)
    positive = jax.random.normal(k2, (n_samples, feat), dtype=jnp.float32)
    negative = jax.random.normal(k3, (n_samples, feat), dtype=jnp.float32)
    new_ratio = 0.8

    loss, dp, dn = triplet_wasserstein_loss(anchor, positive, negative,
                                            new_ratio)
    jax.block_until_ready((loss, dp, dn))

    ref_loss, ref_dp, ref_dn = _reference(anchor, positive, negative,
                                          new_ratio)
    assert jnp.allclose(dp, ref_dp, rtol=1e-3, atol=1e-5)
    assert jnp.allclose(dn, ref_dn, rtol=1e-3, atol=1e-5)
    # loss is a small difference of two O(1) Wasserstein distances, so allow a
    # slightly larger absolute slack for the cancellation.
    assert jnp.allclose(loss, ref_loss, rtol=1e-3, atol=1e-4)
    print("KERNEL_OK")
</pallas_src>

<mosaic_0001>
module attributes {stable_mosaic.version = 11 : i64} {
  func.func @_triplet_wasserstein_kernel(%arg0: memref<1xf32, #tpu.memory_space<smem>>, %arg1: memref<8x32xf32, #tpu.memory_space<vmem>>, %arg2: memref<8x32xf32, #tpu.memory_space<vmem>>, %arg3: memref<8x32xf32, #tpu.memory_space<vmem>>, %arg4: memref<1x1xf32, #tpu.memory_space<vmem>>, %arg5: memref<1x1xf32, #tpu.memory_space<vmem>>, %arg6: memref<1x1xf32, #tpu.memory_space<vmem>>) attributes {dimension_semantics = [], scalar_prefetch = 0 : i64, scratch_operands = 0 : i64, tpu.core_type = #tpu.core_type<tc>} {
    %c0 = arith.constant 0 : index
    %c0_0 = arith.constant 0 : index
    %0 = vector.load %arg1[%c0, %c0_0] : memref<8x32xf32, #tpu.memory_space<vmem>>, vector<8x32xf32>
    %c0_1 = arith.constant 0 : index
    %c0_2 = arith.constant 0 : index
    %1 = vector.load %arg2[%c0_1, %c0_2] : memref<8x32xf32, #tpu.memory_space<vmem>>, vector<8x32xf32>
    %c0_3 = arith.constant 0 : index
    %c0_4 = arith.constant 0 : index
    %2 = vector.load %arg3[%c0_3, %c0_4] : memref<8x32xf32, #tpu.memory_space<vmem>>, vector<8x32xf32>
    %3 = arith.mulf %0, %0 : vector<8x32xf32>
    %cst = arith.constant 2.000000e-06 : f32
    %4 = vector.broadcast %cst : f32 to vector<8x32xf32>
    %5 = arith.mulf %4, %0 : vector<8x32xf32>
    %6 = arith.addf %3, %5 : vector<8x32xf32>
    %cst_5 = arith.constant dense<0.000000e+00> : vector<8xf32>
    %7 = vector.multi_reduction <add>, %6, %cst_5 [1] : vector<8x32xf32> to vector<8xf32>
    %8 = vector.shape_cast %7 : vector<8xf32> to vector<8x1xf32>
    %cst_6 = arith.constant 1.000000e+00 : f32
    %9 = vector.broadcast %cst_6 : f32 to vector<1x32xf32>
    %10 = arith.mulf %1, %1 : vector<8x32xf32>
    %cst_7 = arith.constant 2.000000e-06 : f32
    %11 = vector.broadcast %cst_7 : f32 to vector<8x32xf32>
    %12 = arith.mulf %11, %1 : vector<8x32xf32>
    %13 = arith.subf %10, %12 : vector<8x32xf32>
    %cst_8 = arith.constant dense<0.000000e+00> : vector<1x8xf32>
    %14 = tpu.matmul %9, %13, %cst_8 {dimension_numbers = #tpu.dot_dimension_numbers<[1], [1], [0], [0], [0, 0, 1, 0], [], []>} : vector<1x32xf32>, vector<8x32xf32>, vector<1x8xf32> -> vector<1x8xf32>
    %cst_9 = arith.constant dense<0.000000e+00> : vector<8x8xf32>
    %15 = tpu.matmul %0, %1, %cst_9 {dimension_numbers = #tpu.dot_dimension_numbers<[1], [1], [0], [0], [0, 0, 1, 0], [], []>} : vector<8x32xf32>, vector<8x32xf32>, vector<8x8xf32> -> vector<8x8xf32>
    %16 = vector.broadcast %8 : vector<8x1xf32> to vector<8x8xf32>
    %17 = vector.broadcast %14 : vector<1x8xf32> to vector<8x8xf32>
    %18 = arith.addf %16, %17 : vector<8x8xf32>
    %cst_10 = arith.constant 2.000000e+00 : f32
    %19 = vector.broadcast %cst_10 : f32 to vector<8x8xf32>
    %20 = arith.mulf %19, %15 : vector<8x8xf32>
    %21 = arith.subf %18, %20 : vector<8x8xf32>
    %cst_11 = arith.constant 3.200000e-11 : f32
    %22 = vector.broadcast %cst_11 : f32 to vector<8x8xf32>
    %23 = arith.addf %21, %22 : vector<8x8xf32>
    %24 = arith.mulf %0, %0 : vector<8x32xf32>
    %cst_12 = arith.constant 2.000000e-06 : f32
    %25 = vector.broadcast %cst_12 : f32 to vector<8x32xf32>
    %26 = arith.mulf %25, %0 : vector<8x32xf32>
    %27 = arith.addf %24, %26 : vector<8x32xf32>
    %cst_13 = arith.constant dense<0.000000e+00> : vector<8xf32>
    %28 = vector.multi_reduction <add>, %27, %cst_13 [1] : vector<8x32xf32> to vector<8xf32>
    %29 = vector.shape_cast %28 : vector<8xf32> to vector<8x1xf32>
    %cst_14 = arith.constant 1.000000e+00 : f32
    %30 = vector.broadcast %cst_14 : f32 to vector<1x32xf32>
    %31 = arith.mulf %2, %2 : vector<8x32xf32>
    %cst_15 = arith.constant 2.000000e-06 : f32
    %32 = vector.broadcast %cst_15 : f32 to vector<8x32xf32>
    %33 = arith.mulf %32, %2 : vector<8x32xf32>
    %34 = arith.subf %31, %33 : vector<8x32xf32>
    %cst_16 = arith.constant dense<0.000000e+00> : vector<1x8xf32>
    %35 = tpu.matmul %30, %34, %cst_16 {dimension_numbers = #tpu.dot_dimension_numbers<[1], [1], [0], [0], [0, 0, 1, 0], [], []>} : vector<1x32xf32>, vector<8x32xf32>, vector<1x8xf32> -> vector<1x8xf32>
    %cst_17 = arith.constant dense<0.000000e+00> : vector<8x8xf32>
    %36 = tpu.matmul %0, %2, %cst_17 {dimension_numbers = #tpu.dot_dimension_numbers<[1], [1], [0], [0], [0, 0, 1, 0], [], []>} : vector<8x32xf32>, vector<8x32xf32>, vector<8x8xf32> -> vector<8x8xf32>
    %37 = vector.broadcast %29 : vector<8x1xf32> to vector<8x8xf32>
    %38 = vector.broadcast %35 : vector<1x8xf32> to vector<8x8xf32>
    %39 = arith.addf %37, %38 : vector<8x8xf32>
    %cst_18 = arith.constant 2.000000e+00 : f32
    %40 = vector.broadcast %cst_18 : f32 to vector<8x8xf32>
    %41 = arith.mulf %40, %36 : vector<8x8xf32>
    %42 = arith.subf %39, %41 : vector<8x8xf32>
    %cst_19 = arith.constant 3.200000e-11 : f32
    %43 = vector.broadcast %cst_19 : f32 to vector<8x8xf32>
    %44 = arith.addf %42, %43 : vector<8x8xf32>
    %cst_20 = arith.constant dense<0xFF800000> : vector<8xf32>
    %45 = vector.multi_reduction <maximumf>, %23, %cst_20 [1] : vector<8x8xf32> to vector<8xf32>
    %46 = vector.shape_cast %45 : vector<8xf32> to vector<8x1xf32>
    %cst_21 = arith.constant dense<0xFF800000> : vector<1xf32>
    %47 = vector.multi_reduction <maximumf>, %46, %cst_21 [0] : vector<8x1xf32> to vector<1xf32>
    %48 = vector.shape_cast %47 : vector<1xf32> to vector<1x1xf32>
    %cst_22 = arith.constant 1.000000e+00 : f32
    %49 = vector.broadcast %cst_22 : f32 to vector<1x1xf32>
    %50 = arith.divf %49, %48 : vector<1x1xf32>
    %cst_23 = arith.constant dense<0xFF800000> : vector<8xf32>
    %51 = vector.multi_reduction <maximumf>, %44, %cst_23 [1] : vector<8x8xf32> to vector<8xf32>
    %52 = vector.shape_cast %51 : vector<8xf32> to vector<8x1xf32>
    %cst_24 = arith.constant dense<0xFF800000> : vector<1xf32>
    %53 = vector.multi_reduction <maximumf>, %52, %cst_24 [0] : vector<8x1xf32> to vector<1xf32>
    %54 = vector.shape_cast %53 : vector<1xf32> to vector<1x1xf32>
    %cst_25 = arith.constant 1.000000e+00 : f32
    %55 = vector.broadcast %cst_25 : f32 to vector<1x1xf32>
    %56 = arith.divf %55, %54 : vector<1x1xf32>
    %cst_26 = arith.constant -1.000000e+01 : f32
    %57 = vector.broadcast %cst_26 : f32 to vector<1x1xf32>
    %58 = arith.mulf %50, %57 : vector<1x1xf32>
    %59 = vector.broadcast %58 : vector<1x1xf32> to vector<8x8xf32>
    %60 = arith.mulf %23, %59 : vector<8x8xf32>
    %61 = math.exp %60 : vector<8x8xf32>
    %cst_27 = arith.constant -1.000000e+01 : f32
    %62 = vector.broadcast %cst_27 : f32 to vector<1x1xf32>
    %63 = arith.mulf %56, %62 : vector<1x1xf32>
    %64 = vector.broadcast %63 : vector<1x1xf32> to vector<8x8xf32>
    %65 = arith.mulf %44, %64 : vector<8x8xf32>
    %66 = math.exp %65 : vector<8x8xf32>
    %cst_28 = arith.constant 1.250000e-01 : f32
    %67 = vector.broadcast %cst_28 : f32 to vector<8x1xf32>
    %cst_29 = arith.constant 1.250000e-01 : f32
    %68 = vector.broadcast %cst_29 : f32 to vector<1x8xf32>
    %cst_30 = arith.constant 1.250000e-01 : f32
    %69 = vector.broadcast %cst_30 : f32 to vector<8x1xf32>
    %cst_31 = arith.constant 1.250000e-01 : f32
    %70 = vector.broadcast %cst_31 : f32 to vector<1x8xf32>
    %c0_i32 = arith.constant 0 : i32
    %c25_i32 = arith.constant 25 : i32
    %71 = arith.addi %c0_i32, %c25_i32 : i32
    %c1_i32 = arith.constant 1 : i32
    %72:4 = scf.for %arg7 = %c0_i32 to %71 step %c1_i32 iter_args(%arg8 = %67, %arg9 = %68, %arg10 = %69, %arg11 = %70) -> (vector<8x1xf32>, vector<1x8xf32>, vector<8x1xf32>, vector<1x8xf32>)  : i32 {
      %100 = vector.broadcast %arg8 : vector<8x1xf32> to vector<8x8xf32>
      %101 = arith.mulf %61, %100 : vector<8x8xf32>
      %cst_43 = arith.constant dense<0.000000e+00> : vector<8xf32>
      %102 = vector.multi_reduction <add>, %101, %cst_43 [0] : vector<8x8xf32> to vector<8xf32>
      %103 = vector.shape_cast %102 : vector<8xf32> to vector<1x8xf32>
      %104 = vector.broadcast %arg10 : vector<8x1xf32> to vector<8x8xf32>
      %105 = arith.mulf %66, %104 : vector<8x8xf32>
      %cst_44 = arith.constant dense<0.000000e+00> : vector<8xf32>
      %106 = vector.multi_reduction <add>, %105, %cst_44 [0] : vector<8x8xf32> to vector<8xf32>
      %107 = vector.shape_cast %106 : vector<8xf32> to vector<1x8xf32>
      %cst_45 = arith.constant 1.250000e-01 : f32
      %108 = vector.broadcast %cst_45 : f32 to vector<1x8xf32>
      %109 = arith.divf %108, %103 : vector<1x8xf32>
      %cst_46 = arith.constant 1.250000e-01 : f32
      %110 = vector.broadcast %cst_46 : f32 to vector<1x8xf32>
      %111 = arith.divf %110, %107 : vector<1x8xf32>
      %112 = vector.broadcast %109 : vector<1x8xf32> to vector<8x8xf32>
      %113 = arith.mulf %61, %112 : vector<8x8xf32>
      %cst_47 = arith.constant dense<0.000000e+00> : vector<8xf32>
      %114 = vector.multi_reduction <add>, %113, %cst_47 [1] : vector<8x8xf32> to vector<8xf32>
      %115 = vector.shape_cast %114 : vector<8xf32> to vector<8x1xf32>
      %116 = vector.broadcast %111 : vector<1x8xf32> to vector<8x8xf32>
      %117 = arith.mulf %66, %116 : vector<8x8xf32>
      %cst_48 = arith.constant dense<0.000000e+00> : vector<8xf32>
      %118 = vector.multi_reduction <add>, %117, %cst_48 [1] : vector<8x8xf32> to vector<8xf32>
      %119 = vector.shape_cast %118 : vector<8xf32> to vector<8x1xf32>
      %cst_49 = arith.constant 1.250000e-01 : f32
      %120 = vector.broadcast %cst_49 : f32 to vector<8x1xf32>
      %121 = arith.divf %120, %115 : vector<8x1xf32>
      %cst_50 = arith.constant 1.250000e-01 : f32
      %122 = vector.broadcast %cst_50 : f32 to vector<8x1xf32>
      %123 = arith.divf %122, %119 : vector<8x1xf32>
      %124 = vector.broadcast %121 : vector<8x1xf32> to vector<8x8xf32>
      %125 = arith.mulf %61, %124 : vector<8x8xf32>
      %cst_51 = arith.constant dense<0.000000e+00> : vector<8xf32>
      %126 = vector.multi_reduction <add>, %125, %cst_51 [0] : vector<8x8xf32> to vector<8xf32>
      %127 = vector.shape_cast %126 : vector<8xf32> to vector<1x8xf32>
      %128 = vector.broadcast %123 : vector<8x1xf32> to vector<8x8xf32>
      %129 = arith.mulf %66, %128 : vector<8x8xf32>
      %cst_52 = arith.constant dense<0.000000e+00> : vector<8xf32>
      %130 = vector.multi_reduction <add>, %129, %cst_52 [0] : vector<8x8xf32> to vector<8xf32>
      %131 = vector.shape_cast %130 : vector<8xf32> to vector<1x8xf32>
      %cst_53 = arith.constant 1.250000e-01 : f32
      %132 = vector.broadcast %cst_53 : f32 to vector<1x8xf32>
      %133 = arith.divf %132, %127 : vector<1x8xf32>
      %cst_54 = arith.constant 1.250000e-01 : f32
      %134 = vector.broadcast %cst_54 : f32 to vector<1x8xf32>
      %135 = arith.divf %134, %131 : vector<1x8xf32>
      %136 = vector.broadcast %133 : vector<1x8xf32> to vector<8x8xf32>
      %137 = arith.mulf %61, %136 : vector<8x8xf32>
      %cst_55 = arith.constant dense<0.000000e+00> : vector<8xf32>
      %138 = vector.multi_reduction <add>, %137, %cst_55 [1] : vector<8x8xf32> to vector<8xf32>
      %139 = vector.shape_cast %138 : vector<8xf32> to vector<8x1xf32>
      %140 = vector.broadcast %135 : vector<1x8xf32> to vector<8x8xf32>
      %141 = arith.mulf %66, %140 : vector<8x8xf32>
      %cst_56 = arith.constant dense<0.000000e+00> : vector<8xf32>
      %142 = vector.multi_reduction <add>, %141, %cst_56 [1] : vector<8x8xf32> to vector<8xf32>
      %143 = vector.shape_cast %142 : vector<8xf32> to vector<8x1xf32>
      %cst_57 = arith.constant 1.250000e-01 : f32
      %144 = vector.broadcast %cst_57 : f32 to vector<8x1xf32>
      %145 = arith.divf %144, %139 : vector<8x1xf32>
      %cst_58 = arith.constant 1.250000e-01 : f32
      %146 = vector.broadcast %cst_58 : f32 to vector<8x1xf32>
      %147 = arith.divf %146, %143 : vector<8x1xf32>
      %148 = vector.broadcast %145 : vector<8x1xf32> to vector<8x8xf32>
      %149 = arith.mulf %61, %148 : vector<8x8xf32>
      %cst_59 = arith.constant dense<0.000000e+00> : vector<8xf32>
      %150 = vector.multi_reduction <add>, %149, %cst_59 [0] : vector<8x8xf32> to vector<8xf32>
      %151 = vector.shape_cast %150 : vector<8xf32> to vector<1x8xf32>
      %152 = vector.broadcast %147 : vector<8x1xf32> to vector<8x8xf32>
      %153 = arith.mulf %66, %152 : vector<8x8xf32>
      %cst_60 = arith.constant dense<0.000000e+00> : vector<8xf32>
      %154 = vector.multi_reduction <add>, %153, %cst_60 [0] : vector<8x8xf32> to vector<8xf32>
      %155 = vector.shape_cast %154 : vector<8xf32> to vector<1x8xf32>
      %cst_61 = arith.constant 1.250000e-01 : f32
      %156 = vector.broadcast %cst_61 : f32 to vector<1x8xf32>
      %157 = arith.divf %156, %151 : vector<1x8xf32>
      %cst_62 = arith.constant 1.250000e-01 : f32
      %158 = vector.broadcast %cst_62 : f32 to vector<1x8xf32>
      %159 = arith.divf %158, %155 : vector<1x8xf32>
      %160 = vector.broadcast %157 : vector<1x8xf32> to vector<8x8xf32>
      %161 = arith.mulf %61, %160 : vector<8x8xf32>
      %cst_63 = arith.constant dense<0.000000e+00> : vector<8xf32>
      %162 = vector.multi_reduction <add>, %161, %cst_63 [1] : vector<8x8xf32> to vector<8xf32>
      %163 = vector.shape_cast %162 : vector<8xf32> to vector<8x1xf32>
      %164 = vector.broadcast %159 : vector<1x8xf32> to vector<8x8xf32>
      %165 = arith.mulf %66, %164 : vector<8x8xf32>
      %cst_64 = arith.constant dense<0.000000e+00> : vector<8xf32>
      %166 = vector.multi_reduction <add>, %165, %cst_64 [1] : vector<8x8xf32> to vector<8xf32>
      %167 = vector.shape_cast %166 : vector<8xf32> to vector<8x1xf32>
      %cst_65 = arith.constant 1.250000e-01 : f32
      %168 = vector.broadcast %cst_65 : f32 to vector<8x1xf32>
      %169 = arith.divf %168, %163 : vector<8x1xf32>
      %cst_66 = arith.constant 1.250000e-01 : f32
      %170 = vector.broadcast %cst_66 : f32 to vector<8x1xf32>
      %171 = arith.divf %170, %167 : vector<8x1xf32>
      %172 = vector.broadcast %169 : vector<8x1xf32> to vector<8x8xf32>
      %173 = arith.mulf %61, %172 : vector<8x8xf32>
      %cst_67 = arith.constant dense<0.000000e+00> : vector<8xf32>
      %174 = vector.multi_reduction <add>, %173, %cst_67 [0] : vector<8x8xf32> to vector<8xf32>
      %175 = vector.shape_cast %174 : vector<8xf32> to vector<1x8xf32>
      %176 = vector.broadcast %171 : vector<8x1xf32> to vector<8x8xf32>
      %177 = arith.mulf %66, %176 : vector<8x8xf32>
      %cst_68 = arith.constant dense<0.000000e+00> : vector<8xf32>
      %178 = vector.multi_reduction <add>, %177, %cst_68 [0] : vector<8x8xf32> to vector<8xf32>
      %179 = vector.shape_cast %178 : vector<8xf32> to vector<1x8xf32>
      %cst_69 = arith.constant 1.250000e-01 : f32
      %180 = vector.broadcast %cst_69 : f32 to vector<1x8xf32>
      %181 = arith.divf %180, %175 : vector<1x8xf32>
      %cst_70 = arith.constant 1.250000e-01 : f32
      %182 = vector.broadcast %cst_70 : f32 to vector<1x8xf32>
      %183 = arith.divf %182, %179 : vector<1x8xf32>
      %184 = vector.broadcast %181 : vector<1x8xf32> to vector<8x8xf32>
      %185 = arith.mulf %61, %184 : vector<8x8xf32>
      %cst_71 = arith.constant dense<0.000000e+00> : vector<8xf32>
      %186 = vector.multi_reduction <add>, %185, %cst_71 [1] : vector<8x8xf32> to vector<8xf32>
      %187 = vector.shape_cast %186 : vector<8xf32> to vector<8x1xf32>
      %188 = vector.broadcast %183 : vector<1x8xf32> to vector<8x8xf32>
      %189 = arith.mulf %66, %188 : vector<8x8xf32>
      %cst_72 = arith.constant dense<0.000000e+00> : vector<8xf32>
      %190 = vector.multi_reduction <add>, %189, %cst_72 [1] : vector<8x8xf32> to vector<8xf32>
      %191 = vector.shape_cast %190 : vector<8xf32> to vector<8x1xf32>
      %cst_73 = arith.constant 1.250000e-01 : f32
      %192 = vector.broadcast %cst_73 : f32 to vector<8x1xf32>
      %193 = arith.divf %192, %187 : vector<8x1xf32>
      %cst_74 = arith.constant 1.250000e-01 : f32
      %194 = vector.broadcast %cst_74 : f32 to vector<8x1xf32>
      %195 = arith.divf %194, %191 : vector<8x1xf32>
      scf.yield %193, %181, %195, %183 : vector<8x1xf32>, vector<1x8xf32>, vector<8x1xf32>, vector<1x8xf32>
    }
    %73 = vector.broadcast %72#0 : vector<8x1xf32> to vector<8x8xf32>
    %74 = arith.mulf %73, %61 : vector<8x8xf32>
    %75 = vector.broadcast %72#1 : vector<1x8xf32> to vector<8x8xf32>
    %76 = arith.mulf %74, %75 : vector<8x8xf32>
    %77 = arith.mulf %76, %23 : vector<8x8xf32>
    %cst_32 = arith.constant dense<0.000000e+00> : vector<8xf32>
    %78 = vector.multi_reduction <add>, %77, %cst_32 [1] : vector<8x8xf32> to vector<8xf32>
    %79 = vector.shape_cast %78 : vector<8xf32> to vector<8x1xf32>
    %cst_33 = arith.constant dense<0.000000e+00> : vector<1xf32>
    %80 = vector.multi_reduction <add>, %79, %cst_33 [0] : vector<8x1xf32> to vector<1xf32>
    %81 = vector.shape_cast %80 : vector<1xf32> to vector<1x1xf32>
    %82 = arith.mulf %81, %50 : vector<1x1xf32>
    %83 = vector.broadcast %72#2 : vector<8x1xf32> to vector<8x8xf32>
    %84 = arith.mulf %83, %66 : vector<8x8xf32>
    %85 = vector.broadcast %72#3 : vector<1x8xf32> to vector<8x8xf32>
    %86 = arith.mulf %84, %85 : vector<8x8xf32>
    %87 = arith.mulf %86, %44 : vector<8x8xf32>
    %cst_34 = arith.constant dense<0.000000e+00> : vector<8xf32>
    %88 = vector.multi_reduction <add>, %87, %cst_34 [1] : vector<8x8xf32> to vector<8xf32>
    %89 = vector.shape_cast %88 : vector<8xf32> to vector<8x1xf32>
    %cst_35 = arith.constant dense<0.000000e+00> : vector<1xf32>
    %90 = vector.multi_reduction <add>, %89, %cst_35 [0] : vector<8x1xf32> to vector<1xf32>
    %91 = vector.shape_cast %90 : vector<1xf32> to vector<1x1xf32>
    %92 = arith.mulf %91, %56 : vector<1x1xf32>
    %c0_36 = arith.constant 0 : index
    %93 = memref.load %arg0[%c0_36] : memref<1xf32, #tpu.memory_space<smem>>
    %94 = vector.broadcast %93 : f32 to vector<1x1xf32>
    %95 = arith.mulf %94, %92 : vector<1x1xf32>
    %96 = arith.subf %82, %95 : vector<1x1xf32>
    %c0_37 = arith.constant 0 : index
    %c0_38 = arith.constant 0 : index
    %97 = vector.load %arg4[%c0_37, %c0_38] : memref<1x1xf32, #tpu.memory_space<vmem>>, vector<1x1xf32>
    tpu.vector_store %arg4[%c0_37, %c0_38], %96 {strides = array<i32>} : memref<1x1xf32, #tpu.memory_space<vmem>>, vector<1x1xf32>,
    %c0_39 = arith.constant 0 : index
    %c0_40 = arith.constant 0 : index
    %98 = vector.load %arg5[%c0_39, %c0_40] : memref<1x1xf32, #tpu.memory_space<vmem>>, vector<1x1xf32>
    tpu.vector_store %arg5[%c0_39, %c0_40], %82 {strides = array<i32>} : memref<1x1xf32, #tpu.memory_space<vmem>>, vector<1x1xf32>,
    %c0_41 = arith.constant 0 : index
    %c0_42 = arith.constant 0 : index
    %99 = vector.load %arg6[%c0_41, %c0_42] : memref<1x1xf32, #tpu.memory_space<vmem>>, vector<1x1xf32>
    tpu.vector_store %arg6[%c0_41, %c0_42], %92 {strides = array<i32>} : memref<1x1xf32, #tpu.memory_space<vmem>>, vector<1x1xf32>,
    return
  }
}

</mosaic_0001>

<bundles_post_ra>
// kernel: tpu_custom_call.1
= control target key start
LH: loop header
LB: loop body
LE: loop exit
PB: predicated region body
PF: predicated region fallthrough
CT: control target
= control target key end

     0   :  { %s1103_s0 = inlined_call_operand.<no memory space> [shape: f32[1], index: 0, kind: input, shape index: {}]   ;;  %s1104_s1 = inlined_call_operand.hbm [shape: f32[8,32], index: 1, kind: input, shape index: {}]   ;;  %s1105_s2 = inlined_call_operand.hbm [shape: f32[8,32], index: 2, kind: input, shape index: {}]   ;;  %s1106_s3 = inlined_call_operand.hbm [shape: f32[8,32], index: 3, kind: input, shape index: {}]   ;;  %s1107_s4 = inlined_call_operand.hbm [shape: f32[1,1], index: 4, kind: output, shape index: {0}]   ;;  %s1108_s5 = inlined_call_operand.hbm [shape: f32[1,1], index: 5, kind: output, shape index: {1}]   ;;  %s1109_s6 = inlined_call_operand.hbm [shape: f32[1,1], index: 6, kind: output, shape index: {2}]  }
   0x1   :  { %12 = sst [smem:[#allocation2]] %s1103_s0 }
   0x2   :  { %13 = vsyncpa [#allocation4], 0 }
   0x3   :  { %14 = vsyncpa [#allocation7], 0 }
   0x4   :  { %15 = vsyncpa [#allocation5], 0  ;;  %s35_s25 = sshll.u32 %s1105_s2, 4  ;;  %s36_s25 = int_to_ptr.hbm [resolvable:$true] %s35_s25 }
   0x5   :  { %16 = vsyncpa [#allocation11], 0  ;;  %s946_s26 = smov [#allocation6]   ;;  %s24_s30 = sshll.u32 %s1104_s1, 4  ;;  %s25_s30 = int_to_ptr.hbm [resolvable:$true] %s24_s30 }
   0x6   :  { %s37_s27 = sshll.u32 %s946_s26, 4  ;;  %s947_s7 = smov [#allocation3]   ;;  %s38_s27 = int_to_ptr.vmem [resolvable:$true] %s37_s27 }
   0x7   :  { %40 = dma.hbm_to_vmem [thread:$0]  %s36_s25, 128, %s38_s27, [#allocation7]  }
   0x8   :  { %s26_s0 = sshll.u32 %s947_s7, 4  ;;  %s46_s10 = sshll.u32 %s1106_s3, 4  ;;  %s27_s0 = int_to_ptr.vmem [resolvable:$true] %s26_s0  ;;  %s47_s10 = int_to_ptr.hbm [resolvable:$true] %s46_s10 }
   0x9   :  { %29 = dma.hbm_to_vmem [thread:$0]  %s25_s30, 128, %s27_s0, [#allocation4]  }
   0xa   :  { %s948_s2 = smov [#allocation8]  }
   0xb   :  { %s48_s11 = sshll.u32 %s948_s2, 4  ;;  %s49_s11 = int_to_ptr.vmem [resolvable:$true] %s48_s11 }
   0xc   :  { %51 = dma.hbm_to_vmem [thread:$0]  %s47_s10, 128, %s49_s11, [#allocation7]  }
   0xd   :  { %926 = dma.done.wait [#allocation4], 128  }
   0xe   :  { %927 = vsyncadd [#allocation4], 4294967168 }
   0xf   :  { %928 = dma.done.wait [#allocation7], 256  }
  0x10   :  { %929 = vsyncadd [#allocation7], 4294967040  ;;  %v65_v0 = vld [vmem:[#allocation6] sm:$0xff]  ;;  %vm70_vm0 = vcmask 261120   ;;  %v66_v1 = vld [vmem:[#allocation8] sm:$0xff]  ;;  %v949_v13 = vmov 1.0  }
  0x11   :  { %v74_v2 = vmul.f32 %v65_v0, %v65_v0  ;;  %v75_v3 = vmul.f32 2e-06, %v65_v0  ;;  %v134_v4 = vmul.f32 %v66_v1, %v66_v1  ;;  %v135_v5 = vmul.f32 2e-06, %v66_v1  ;;  %693 = vmatpush.xpose.msk.msra.mxu1 %vm70_vm0, %v65_v0  ;;  %697 = vmatpush.xpose.msk.msra.mxu3 %vm70_vm0, %v66_v1  ;;  %v64_v6 = vld [vmem:[#allocation3] sm:$0xff]  ;;  %s1033_s1 = smov 0  }
  0x12   :  { %v67_v7 = vmul.f32 %v64_v6, %v64_v6  ;;  %v68_v8 = vmul.f32 2e-06, %v64_v6  ;;  %vm188_vm1 = vcmask 64512  }
  0x13   :  { %v76_v9 = vsub.f32 %v74_v2, %v75_v3  ;;  %v136_v10 = vsub.f32 %v134_v4, %v135_v5 }
  0x14   :  { %694 = vmatmul.msk.f32.vlgmr.msra.gmra.mxu1 %vm70_vm0, %v64_v6  ;;  %698 = vmatmul.msk.f32.vlgmr.msra.gmra.mxu3 %vm70_vm0, %v64_v6  ;;  %v69_v11 = vadd.f32 %v68_v8, %v67_v7 }
  0x15   :  { %691 = vmatpush.xpose.msk.msra.mxu0 %vm70_vm0, %v76_v9  ;;  %695 = vmatpush.xpose.msk.msra.mxu2 %vm70_vm0, %v136_v10  ;;  %v1029_v9 = vmov 0.125   ;;  %v1031_v10 = vmov 0.125  }
  0x16   :  { %v71_v12 = vsel %vm70_vm0, %v69_v11, 0.0 }
  0x17   :  { %72 = vadd.xlane.f32.xlu0 %v71_v12 }
  0x18   :  { %692 = vmatmul.msk.f32.vlgmr.msra.gmra.mxu0 %vm70_vm0, %v949_v13  ;;  %696 = vmatmul.msk.f32.vlgmr.msra.gmra.mxu2 %vm70_vm0, %v949_v13 }
  0x8a   :  { %v73_v16 = vpop.xlane.xlu0 %72 }
  0x91   :  { %v126_v14 = vpop.f32.mrf.mxu1 }
  0x92   :  { %v131_v18 = vmul.f32 2.0, %v126_v14 }
  0x95   :  { %v100_v15 = vpop.f32.mrf.mxu0 }
  0x96   :  { %v129_v17 = vperm.slane %v100_v15, 0 }
  0x97   :  { %v180_v20 = vpop.f32.mrf.mxu3 }
  0x98   :  { %v130_v19 = vadd.f32 %v129_v17, %v73_v16  ;;  %v185_v24 = vmul.f32 2.0, %v180_v20 }
  0x9a   :  { %v132_v21 = vsub.f32 %v130_v19, %v131_v18 }
  0x9b   :  { %v157_v22 = vpop.f32.mrf.mxu2 }
  0x9c   :  { %v183_v23 = vperm.slane %v157_v22, 0  ;;  %v1009_v25 = vadd.f32 3.2e-11, %v132_v21 }
  0x9e   :  { %v184_v26 = vadd.f32 %v183_v23, %v73_v16  ;;  %v189_v27 = vsel %vm188_vm1, %v1009_v25, -inf }
  0x9f   :  { %190 = vmax.xlane.f32.xlu0 %v189_v27 }
  0xa0   :  { %v186_v28 = vsub.f32 %v184_v26, %v185_v24 }
  0xa2   :  { %v1013_v29 = vadd.f32 3.2e-11, %v186_v28 }
  0xa4   :  { %v213_v30 = vsel %vm188_vm1, %v1013_v29, -inf }
  0xa5   :  { %214 = vmax.xlane.f32.xlu1 %v213_v30 }
 0x112   :  { %v191_v31 = vpop.xlane.xlu0 %190 }
 0x113   :  { %v192_v32 = vrot.slane %v191_v31, 4 }
 0x115   :  { %v193_v33 = vmax.f32 %v191_v31, %v192_v32 }
 0x117   :  { %v194_v34 = vrot.slane %v193_v33, 2 }
 0x118   :  { %v215_v35 = vpop.xlane.xlu1 %214 }
 0x119   :  { %v195_v36 = vmax.f32 %v193_v33, %v194_v34  ;;  %v216_v37 = vrot.slane %v215_v35, 4 }
 0x11b   :  { %v196_v38 = vrot.slane %v195_v36, 1  ;;  %v217_v39 = vmax.f32 %v215_v35, %v216_v37 }
 0x11d   :  { %v197_v40 = vmax.f32 %v195_v36, %v196_v38  ;;  %v218_v41 = vrot.slane %v217_v39, 2 }
 0x11f   :  { %730 = vrcp.f32 %v197_v40  ;;  %v219_v42 = vmax.f32 %v217_v39, %v218_v41  ;;  %v209_v48 = vand.u32 2147483648, %v197_v40  ;;  %v207_v50 = vand.u32 2147483647, %v197_v40 }
 0x120   :  { %vm203_vm3 = vweird.f32 %v197_v40 }
 0x121   :  { %v220_v43 = vrot.slane %v219_v42, 1  ;;  %v210_v53 = vor.u32 1.1754944e-38, %v209_v48  ;;  %vm208_vm5 = vcmp.eq.f32.partialorder %v207_v50, 8.507059e+37 }
 0x123   :  { %v221_v44 = vmax.f32 %v219_v42, %v220_v43 }
 0x125   :  { %v731_v45 = vpop.eup %730  ;;  %732 = vrcp.f32 %v221_v44  ;;  %v233_v59 = vand.u32 2147483648, %v221_v44  ;;  %v231_v61 = vand.u32 2147483647, %v221_v44  ;;  %vm227_vm7 = vweird.f32 %v221_v44 }
 0x126   :  { %v199_v46 = vmul.f32 %v731_v45, %v197_v40  ;;  %vm204_vm2 = vweird.f32 %v731_v45 }
 0x127   :  { %vm205_vm4 = vmor %vm203_vm3, %vm204_vm2  ;;  %v234_v1 = vor.u32 1.1754944e-38, %v233_v59  ;;  %vm232_vm9 = vcmp.eq.f32.partialorder %v231_v61, 8.507059e+37 }
 0x128   :  { %v200_v47 = vsub.f32 1.0, %v199_v46 }
 0x12a   :  { %v201_v49 = vmul.f32 %v731_v45, %v200_v47 }
 0x12b   :  { %v733_v51 = vpop.eup %732 }
 0x12c   :  { %v202_v52 = vadd.f32 %v731_v45, %v201_v49  ;;  %v223_v54 = vmul.f32 %v733_v51, %v221_v44  ;;  %vm228_vm6 = vweird.f32 %v733_v51 }
 0x12d   :  { %vm229_vm8 = vmor %vm227_vm7, %vm228_vm6 }
 0x12e   :  { %v206_v55 = vsel %vm205_vm4, %v731_v45, %v202_v52  ;;  %v224_v57 = vsub.f32 1.0, %v223_v54 }
 0x12f   :  { %v1017_v56 = vsel %vm208_vm5, %v210_v53, %v206_v55 }
 0x130   :  { %v237_v58 = vmul.f32 -10.0, %v1017_v56  ;;  %v225_v60 = vmul.f32 %v733_v51, %v224_v57 }
 0x132   :  { %v238_v62 = vmul.f32 %v237_v58, %v1009_v25  ;;  %v226_v63 = vadd.f32 %v733_v51, %v225_v60 }
 0x134   :  { %v239_v0 = vmul.f32 1.442695, %v238_v62  ;;  %v230_v2 = vsel %vm229_vm8, %v733_v51, %v226_v63 }
 0x135   :  { %v1021_v3 = vsel %vm232_vm9, %v234_v1, %v230_v2 }
 0x136   :  { %734 = vpow2.f32 %v239_v0  ;;  %v241_v4 = vmul.f32 -10.0, %v1021_v3 }
 0x138   :  { %v242_v5 = vmul.f32 %v241_v4, %v1013_v29 }
 0x13a   :  { %v243_v6 = vmul.f32 1.442695, %v242_v5 }
 0x13c   :  { %v1025_v7 = vpop.eup %734  ;;  %736 = vpow2.f32 %v243_v6 }
 0x142   :  { %v1027_v8 = vpop.eup %736 }
 0x143 LB: > { %v255_v11 = vmul.f32 %v940_v10, %v1025_v7  ;;  %v263_v12 = vmul.f32 %v936_v9, %v1027_v8  ;;  %s250_s1 = sadd.s32 1, %s944_s1   ;;  %s944_s1 = sphi %s1033_s1, %s250_s1   ;;  %v940_v10 = vphi %v1031_v10, %v1111_v10   ;;  %v936_v9 = vphi %v1029_v9, %v1110_v9  }
 0x144   : > { %p247_p0 = scmp.ge.s32.totalorder %s250_s1, 25  }
 0x145   : > { %v256_v13 = vsel %vm188_vm1, %v255_v11, 0.0  ;;  %v264_v14 = vsel %vm188_vm1, %v263_v12, 0.0  ;;  %s617_s3 = sld [smem:[#allocation2]] (%p247_p0)  ;;  %s950_s12 = smov (%p247_p0), [#allocation10]  }
 0x146   : > { %v257_v15 = vrot.slane %v256_v13, 4  ;;  %v265_v16 = vrot.slane %v264_v14, 4  ;;  %s641_s13 = sshll.u32 (%p247_p0), %s950_s12, 4  ;;  %s643_s16 = sshll.u32 (%p247_p0), %s1108_s5, 4  ;;  %s642_s13 = int_to_ptr.vmem [resolvable:$true] %s641_s13  ;;  %s644_s16 = int_to_ptr.hbm [resolvable:$true] %s643_s16 }
 0x147   :  { %s951_s17 = smov (%p247_p0), [#allocation12]   ;;  %s654_s21 = sshll.u32 (%p247_p0), %s1109_s6, 4  ;;  %s655_s21 = int_to_ptr.hbm [resolvable:$true] %s654_s21 }
 0x148   : > { %v258_v17 = vadd.f32 %v257_v15, %v256_v13  ;;  %v266_v18 = vadd.f32 %v265_v16, %v264_v14  ;;  %s652_s18 = sshll.u32 (%p247_p0), %s951_s17, 4  ;;  %s952_s22 = smov (%p247_p0), [#allocation9]   ;;  %s653_s18 = int_to_ptr.vmem [resolvable:$true] %s652_s18 }
 0x149   :  { %s630_s23 = sshll.u32 (%p247_p0), %s952_s22, 4  ;;  %s632_s26 = sshll.u32 (%p247_p0), %s1107_s4, 4  ;;  %s631_s23 = int_to_ptr.vmem [resolvable:$true] %s630_s23  ;;  %s633_s26 = int_to_ptr.hbm [resolvable:$true] %s632_s26 }
 0x14a   : > { %v259_v19 = vrot.slane %v258_v17, 2  ;;  %v267_v20 = vrot.slane %v266_v18, 2 }
 0x14c   : > { %v260_v21 = vadd.f32 %v259_v19, %v258_v17  ;;  %v268_v22 = vadd.f32 %v267_v20, %v266_v18 }
 0x14e   : > { %v261_v23 = vrot.slane %v260_v21, 1  ;;  %v269_v24 = vrot.slane %v268_v22, 1 }
 0x150   : > { %v262_v26 = vadd.f32 %v261_v23, %v260_v21  ;;  %v270_v27 = vadd.f32 %v269_v24, %v268_v22 }
 0x152   : > { %738 = vrcp.f32 %v262_v26  ;;  %vm276_vm10 = vweird.f32 %v262_v26  ;;  %v282_v32 = vand.u32 2147483648, %v262_v26  ;;  %v280_v35 = vand.u32 2147483647, %v262_v26 }
 0x153   : > { %740 = vrcp.f32 %v270_v27  ;;  %v297_v36 = vand.u32 2147483648, %v270_v27  ;;  %vm291_vm12 = vweird.f32 %v270_v27  ;;  %v295_v38 = vand.u32 2147483647, %v270_v27 }
 0x154   : > { %v283_v40 = vor.u32 1.1754944e-38, %v282_v32  ;;  %vm281_vm15 = vcmp.eq.f32.partialorder %v280_v35, 8.507059e+37 }
 0x155   : > { %v298_v43 = vor.u32 1.1754944e-38, %v297_v36  ;;  %vm296_vm2 = vcmp.eq.f32.partialorder %v295_v38, 8.507059e+37 }
 0x158   : > { %v739_v28 = vpop.eup %738 }
 0x159   : > { %v741_v30 = vpop.eup %740  ;;  %v272_v31 = vmul.f32 %v739_v28, %v262_v26  ;;  %vm277_vm11 = vweird.f32 %v739_v28 }
 0x15a   : > { %v287_v33 = vmul.f32 %v741_v30, %v270_v27  ;;  %vm292_vm13 = vweird.f32 %v741_v30  ;;  %vm278_vm14 = vmor %vm276_vm10, %vm277_vm11 }
 0x15b   : > { %v273_v34 = vsub.f32 1.0, %v272_v31  ;;  %vm293_vm0 = vmor %vm291_vm12, %vm292_vm13 }
 0x15c   : > { %v288_v37 = vsub.f32 1.0, %v287_v33 }
 0x15d   : > { %v274_v39 = vmul.f32 %v739_v28, %v273_v34 }
 0x15e   : > { %v289_v41 = vmul.f32 %v741_v30, %v288_v37 }
 0x15f   : > { %v275_v42 = vadd.f32 %v739_v28, %v274_v39 }
 0x160   : > { %v290_v44 = vadd.f32 %v741_v30, %v289_v41 }
 0x161   : > { %v279_v45 = vsel %vm278_vm14, %v739_v28, %v275_v42 }
 0x162   : > { %v284_v46 = vsel %vm281_vm15, %v283_v40, %v279_v45  ;;  %v294_v47 = vsel %vm293_vm0, %v741_v30, %v290_v44 }
 0x163   : > { %v285_v48 = vmul.f32 0.125, %v284_v46  ;;  %v299_v49 = vsel %vm296_vm2, %v298_v43, %v294_v47 }
 0x164   : > { %v300_v51 = vmul.f32 0.125, %v299_v49 }
 0x165   : > { %v301_v50 = vmul.f32 %v1025_v7, %v285_v48 }
 0x166   : > { %v305_v53 = vmul.f32 %v1027_v8, %v300_v51 }
 0x167   : > { %v302_v52 = vsel %vm188_vm1, %v301_v50, 0.0 }
 0x168   : > { %303 = vadd.xlane.f32.xlu0 %v302_v52  ;;  %v306_v54 = vsel %vm188_vm1, %v305_v53, 0.0 }
 0x170   : > { %307 = vadd.xlane.f32.xlu0 %v306_v54 }
 0x1db   : > { %v304_v55 = vpop.xlane.xlu0 %303 }
 0x1dc   : > { %742 = vrcp.f32 %v304_v55  ;;  %v320_v61 = vand.u32 2147483648, %v304_v55  ;;  %v318_v63 = vand.u32 2147483647, %v304_v55  ;;  %vm314_vm4 = vweird.f32 %v304_v55 }
 0x1de   : > { %v321_v2 = vor.u32 1.1754944e-38, %v320_v61  ;;  %vm319_vm6 = vcmp.eq.f32.partialorder %v318_v63, 8.507059e+37 }
 0x1e2   : > { %v743_v57 = vpop.eup %742 }
 0x1e3   : > { %v310_v58 = vmul.f32 %v743_v57, %v304_v55  ;;  %v308_v59 = vpop.xlane.xlu0 %307  ;;  %vm315_vm3 = vweird.f32 %v743_v57 }
 0x1e4   : > { %744 = vrcp.f32 %v308_v59  ;;  %vm316_vm5 = vmor %vm314_vm4, %vm315_vm3  ;;  %v335_v11 = vand.u32 2147483648, %v308_v59  ;;  %v333_v14 = vand.u32 2147483647, %v308_v59  ;;  %vm329_vm8 = vweird.f32 %v308_v59 }
 0x1e5   : > { %v311_v60 = vsub.f32 1.0, %v310_v58 }
 0x1e6   : > { %v336_v18 = vor.u32 1.1754944e-38, %v335_v11  ;;  %vm334_vm10 = vcmp.eq.f32.partialorder %v333_v14, 8.507059e+37 }
 0x1e7   : > { %v312_v62 = vmul.f32 %v743_v57, %v311_v60 }
 0x1e9   : > { %v313_v0 = vadd.f32 %v743_v57, %v312_v62 }
 0x1ea   : > { %v745_v1 = vpop.eup %744 }
 0x1eb   : > { %v317_v4 = vsel %vm316_vm5, %v743_v57, %v313_v0  ;;  %v325_v5 = vmul.f32 %v745_v1, %v308_v59  ;;  %vm330_vm7 = vweird.f32 %v745_v1 }
 0x1ec   : > { %v322_v6 = vsel %vm319_vm6, %v321_v2, %v317_v4  ;;  %vm331_vm9 = vmor %vm329_vm8, %vm330_vm7 }
 0x1ed   : > { %v323_v9 = vmul.f32 0.125, %v322_v6  ;;  %v326_v10 = vsub.f32 1.0, %v325_v5 }
 0x1ef   : > { %v339_v12 = vmul.f32 %v1025_v7, %v323_v9  ;;  %v327_v13 = vmul.f32 %v745_v1, %v326_v10 }
 0x1f1   : > { %v340_v15 = vsel %vm188_vm1, %v339_v12, 0.0  ;;  %v328_v16 = vadd.f32 %v745_v1, %v327_v13 }
 0x1f2   : > { %v341_v17 = vrot.slane %v340_v15, 4 }
 0x1f3   : > { %v332_v19 = vsel %vm331_vm9, %v745_v1, %v328_v16 }
 0x1f4   : > { %v342_v20 = vadd.f32 %v341_v17, %v340_v15  ;;  %v337_v21 = vsel %vm334_vm10, %v336_v18, %v332_v19 }
 0x1f5   : > { %v338_v22 = vmul.f32 0.125, %v337_v21 }
 0x1f6   : > { %v343_v23 = vrot.slane %v342_v20, 2 }
 0x1f7   : > { %v347_v24 = vmul.f32 %v1027_v8, %v338_v22 }
 0x1f8   : > { %v344_v26 = vadd.f32 %v343_v23, %v342_v20 }
 0x1f9   : > { %v348_v27 = vsel %vm188_vm1, %v347_v24, 0.0 }
 0x1fa   : > { %v345_v28 = vrot.slane %v344_v26, 1  ;;  %v349_v30 = vrot.slane %v348_v27, 4 }
 0x1fc   : > { %v350_v31 = vadd.f32 %v349_v30, %v348_v27  ;;  %v346_v32 = vadd.f32 %v345_v28, %v344_v26 }
 0x1fe   : > { %v351_v33 = vrot.slane %v350_v31, 2  ;;  %746 = vrcp.f32 %v346_v32  ;;  %v366_v40 = vand.u32 2147483648, %v346_v32  ;;  %v364_v42 = vand.u32 2147483647, %v346_v32 }
 0x1ff   : > { %vm360_vm12 = vweird.f32 %v346_v32 }
 0x200   : > { %v352_v34 = vadd.f32 %v351_v33, %v350_v31  ;;  %v367_v45 = vor.u32 1.1754944e-38, %v366_v40  ;;  %vm365_vm14 = vcmp.eq.f32.partialorder %v364_v42, 8.507059e+37 }
 0x202   : > { %v353_v35 = vrot.slane %v352_v34, 1 }
 0x204   : > { %v747_v36 = vpop.eup %746  ;;  %v354_v37 = vadd.f32 %v353_v35, %v352_v34 }
 0x205   : > { %v356_v38 = vmul.f32 %v747_v36, %v346_v32  ;;  %vm361_vm11 = vweird.f32 %v747_v36 }
 0x206   : > { %748 = vrcp.f32 %v354_v37  ;;  %vm362_vm13 = vmor %vm360_vm12, %vm361_vm11  ;;  %v381_v51 = vand.u32 2147483648, %v354_v37  ;;  %v379_v54 = vand.u32 2147483647, %v354_v37  ;;  %vm375_vm0 = vweird.f32 %v354_v37 }
 0x207   : > { %v357_v39 = vsub.f32 1.0, %v356_v38 }
 0x208   : > { %v382_v58 = vor.u32 1.1754944e-38, %v381_v51  ;;  %vm380_vm3 = vcmp.eq.f32.partialorder %v379_v54, 8.507059e+37 }
 0x209   : > { %v358_v41 = vmul.f32 %v747_v36, %v357_v39 }
 0x20b   : > { %v359_v43 = vadd.f32 %v747_v36, %v358_v41 }
 0x20c   : > { %v749_v44 = vpop.eup %748 }
 0x20d   : > { %v363_v46 = vsel %vm362_vm13, %v747_v36, %v359_v43  ;;  %v371_v47 = vmul.f32 %v749_v44, %v354_v37  ;;  %vm376_vm15 = vweird.f32 %v749_v44 }
 0x20e   : > { %v368_v48 = vsel %vm365_vm14, %v367_v45, %v363_v46  ;;  %vm377_vm2 = vmor %vm375_vm0, %vm376_vm15 }
 0x20f   : > { %v369_v49 = vmul.f32 0.125, %v368_v48  ;;  %v372_v50 = vsub.f32 1.0, %v371_v47 }
 0x211   : > { %v385_v52 = vmul.f32 %v1025_v7, %v369_v49  ;;  %v373_v53 = vmul.f32 %v749_v44, %v372_v50 }
 0x213   : > { %v386_v55 = vsel %vm188_vm1, %v385_v52, 0.0  ;;  %v374_v57 = vadd.f32 %v749_v44, %v373_v53 }
 0x214   : > { %387 = vadd.xlane.f32.xlu1 %v386_v55 }
 0x215   : > { %v378_v59 = vsel %vm377_vm2, %v749_v44, %v374_v57 }
 0x216   : > { %v383_v60 = vsel %vm380_vm3, %v382_v58, %v378_v59 }
 0x217   : > { %v384_v61 = vmul.f32 0.125, %v383_v60 }
 0x219   : > { %v389_v62 = vmul.f32 %v1027_v8, %v384_v61 }
 0x21b   : > { %v390_v63 = vsel %vm188_vm1, %v389_v62, 0.0 }
 0x21c   : > { %391 = vadd.xlane.f32.xlu1 %v390_v63 }
 0x287   : > { %v388_v0 = vpop.xlane.xlu1 %387 }
 0x288   : > { %750 = vrcp.f32 %v388_v0  ;;  %v404_v6 = vand.u32 2147483648, %v388_v0  ;;  %v402_v10 = vand.u32 2147483647, %v388_v0  ;;  %vm398_vm5 = vweird.f32 %v388_v0 }
 0x28a   : > { %v405_v13 = vor.u32 1.1754944e-38, %v404_v6  ;;  %vm403_vm7 = vcmp.eq.f32.partialorder %v402_v10, 8.507059e+37 }
 0x28e   : > { %v751_v1 = vpop.eup %750 }
 0x28f   : > { %v394_v2 = vmul.f32 %v751_v1, %v388_v0  ;;  %v392_v4 = vpop.xlane.xlu1 %391  ;;  %vm399_vm4 = vweird.f32 %v751_v1 }
 0x290   : > { %752 = vrcp.f32 %v392_v4  ;;  %vm400_vm6 = vmor %vm398_vm5, %vm399_vm4  ;;  %v419_v19 = vand.u32 2147483648, %v392_v4  ;;  %v417_v22 = vand.u32 2147483647, %v392_v4  ;;  %vm413_vm9 = vweird.f32 %v392_v4 }
 0x291   : > { %v395_v5 = vsub.f32 1.0, %v394_v2 }
 0x292   : > { %v420_v27 = vor.u32 1.1754944e-38, %v419_v19  ;;  %vm418_vm11 = vcmp.eq.f32.partialorder %v417_v22, 8.507059e+37 }
 0x293   : > { %v396_v9 = vmul.f32 %v751_v1, %v395_v5 }
 0x295   : > { %v397_v11 = vadd.f32 %v751_v1, %v396_v9 }
 0x296   : > { %v753_v12 = vpop.eup %752 }
 0x297   : > { %v401_v14 = vsel %vm400_vm6, %v751_v1, %v397_v11  ;;  %v409_v15 = vmul.f32 %v753_v12, %v392_v4  ;;  %vm414_vm8 = vweird.f32 %v753_v12 }
 0x298   : > { %v406_v16 = vsel %vm403_vm7, %v405_v13, %v401_v14  ;;  %vm415_vm10 = vmor %vm413_vm9, %vm414_vm8 }
 0x299   : > { %v407_v17 = vmul.f32 0.125, %v406_v16  ;;  %v410_v18 = vsub.f32 1.0, %v409_v15 }
 0x29b   : > { %v423_v20 = vmul.f32 %v1025_v7, %v407_v17  ;;  %v411_v21 = vmul.f32 %v753_v12, %v410_v18 }
 0x29d   : > { %v424_v23 = vsel %vm188_vm1, %v423_v20, 0.0  ;;  %v412_v24 = vadd.f32 %v753_v12, %v411_v21 }
 0x29e   : > { %v425_v26 = vrot.slane %v424_v23, 4 }
 0x29f   : > { %v416_v28 = vsel %vm415_vm10, %v753_v12, %v412_v24 }
 0x2a0   : > { %v426_v30 = vadd.f32 %v425_v26, %v424_v23  ;;  %v421_v31 = vsel %vm418_vm11, %v420_v27, %v416_v28 }
 0x2a1   : > { %v422_v32 = vmul.f32 0.125, %v421_v31 }
 0x2a2   : > { %v427_v33 = vrot.slane %v426_v30, 2 }
 0x2a3   : > { %v431_v34 = vmul.f32 %v1027_v8, %v422_v32 }
 0x2a4   : > { %v428_v35 = vadd.f32 %v427_v33, %v426_v30 }
 0x2a5   : > { %v432_v36 = vsel %vm188_vm1, %v431_v34, 0.0 }
 0x2a6   : > { %v429_v37 = vrot.slane %v428_v35, 1  ;;  %v433_v38 = vrot.slane %v432_v36, 4 }
 0x2a8   : > { %v434_v39 = vadd.f32 %v433_v38, %v432_v36  ;;  %v430_v40 = vadd.f32 %v429_v37, %v428_v35 }
 0x2aa   : > { %v435_v41 = vrot.slane %v434_v39, 2  ;;  %754 = vrcp.f32 %v430_v40  ;;  %v450_v48 = vand.u32 2147483648, %v430_v40  ;;  %v448_v50 = vand.u32 2147483647, %v430_v40 }
 0x2ab   : > { %vm444_vm13 = vweird.f32 %v430_v40 }
 0x2ac   : > { %v436_v42 = vadd.f32 %v435_v41, %v434_v39  ;;  %v451_v53 = vor.u32 1.1754944e-38, %v450_v48  ;;  %vm449_vm15 = vcmp.eq.f32.partialorder %v448_v50, 8.507059e+37 }
 0x2ae   : > { %v437_v43 = vrot.slane %v436_v42, 1 }
 0x2b0   : > { %v755_v44 = vpop.eup %754  ;;  %v438_v45 = vadd.f32 %v437_v43, %v436_v42 }
 0x2b1   : > { %v440_v46 = vmul.f32 %v755_v44, %v430_v40  ;;  %vm445_vm12 = vweird.f32 %v755_v44 }
 0x2b2   : > { %756 = vrcp.f32 %v438_v45  ;;  %vm446_vm14 = vmor %vm444_vm13, %vm445_vm12  ;;  %v465_v60 = vand.u32 2147483648, %v438_v45  ;;  %v463_v63 = vand.u32 2147483647, %v438_v45  ;;  %vm459_vm2 = vweird.f32 %v438_v45 }
 0x2b3   : > { %v441_v47 = vsub.f32 1.0, %v440_v46 }
 0x2b4   : > { %v466_v2 = vor.u32 1.1754944e-38, %v465_v60  ;;  %vm464_vm4 = vcmp.eq.f32.partialorder %v463_v63, 8.507059e+37 }
 0x2b5   : > { %v442_v49 = vmul.f32 %v755_v44, %v441_v47 }
 0x2b7   : > { %v443_v51 = vadd.f32 %v755_v44, %v442_v49 }
 0x2b8   : > { %v757_v52 = vpop.eup %756 }
 0x2b9   : > { %v447_v54 = vsel %vm446_vm14, %v755_v44, %v443_v51  ;;  %v455_v55 = vmul.f32 %v757_v52, %v438_v45  ;;  %vm460_vm0 = vweird.f32 %v757_v52 }
 0x2ba   : > { %v452_v57 = vsel %vm449_vm15, %v451_v53, %v447_v54  ;;  %vm461_vm3 = vmor %vm459_vm2, %vm460_vm0 }
 0x2bb   : > { %v453_v58 = vmul.f32 0.125, %v452_v57  ;;  %v456_v59 = vsub.f32 1.0, %v455_v55 }
 0x2bd   : > { %v469_v61 = vmul.f32 %v1025_v7, %v453_v58  ;;  %v457_v62 = vmul.f32 %v757_v52, %v456_v59 }
 0x2bf   : > { %v470_v0 = vsel %vm188_vm1, %v469_v61, 0.0  ;;  %v458_v1 = vadd.f32 %v757_v52, %v457_v62 }
 0x2c0   : > { %471 = vadd.xlane.f32.xlu2 %v470_v0 }
 0x2c1   : > { %v462_v4 = vsel %vm461_vm3, %v757_v52, %v458_v1 }
 0x2c2   : > { %v467_v5 = vsel %vm464_vm4, %v466_v2, %v462_v4 }
 0x2c3   : > { %v468_v6 = vmul.f32 0.125, %v467_v5 }
 0x2c5   : > { %v473_v9 = vmul.f32 %v1027_v8, %v468_v6 }
 0x2c7   : > { %v474_v10 = vsel %vm188_vm1, %v473_v9, 0.0 }
 0x2c8   : > { %475 = vadd.xlane.f32.xlu2 %v474_v10 }
 0x333   : > { %v472_v11 = vpop.xlane.xlu2 %471 }
 0x334   : > { %758 = vrcp.f32 %v472_v11  ;;  %v488_v16 = vand.u32 2147483648, %v472_v11  ;;  %v486_v18 = vand.u32 2147483647, %v472_v11  ;;  %vm482_vm6 = vweird.f32 %v472_v11 }
 0x336   : > { %v489_v21 = vor.u32 1.1754944e-38, %v488_v16  ;;  %vm487_vm8 = vcmp.eq.f32.partialorder %v486_v18, 8.507059e+37 }
 0x33a   : > { %v759_v12 = vpop.eup %758 }
 0x33b   : > { %v478_v13 = vmul.f32 %v759_v12, %v472_v11  ;;  %v476_v14 = vpop.xlane.xlu2 %475  ;;  %vm483_vm5 = vweird.f32 %v759_v12 }
 0x33c   : > { %760 = vrcp.f32 %v476_v14  ;;  %vm484_vm7 = vmor %vm482_vm6, %vm483_vm5  ;;  %v503_v28 = vand.u32 2147483648, %v476_v14  ;;  %v501_v32 = vand.u32 2147483647, %v476_v14  ;;  %vm497_vm10 = vweird.f32 %v476_v14 }
 0x33d   : > { %v479_v15 = vsub.f32 1.0, %v478_v13 }
 0x33e   : > { %v504_v36 = vor.u32 1.1754944e-38, %v503_v28  ;;  %vm502_vm12 = vcmp.eq.f32.partialorder %v501_v32, 8.507059e+37 }
 0x33f   : > { %v480_v17 = vmul.f32 %v759_v12, %v479_v15 }
 0x341   : > { %v481_v19 = vadd.f32 %v759_v12, %v480_v17 }
 0x342   : > { %v761_v20 = vpop.eup %760 }
 0x343   : > { %v485_v22 = vsel %vm484_vm7, %v759_v12, %v481_v19  ;;  %v493_v23 = vmul.f32 %v761_v20, %v476_v14  ;;  %vm498_vm9 = vweird.f32 %v761_v20 }
 0x344   : > { %v490_v24 = vsel %vm487_vm8, %v489_v21, %v485_v22  ;;  %vm499_vm11 = vmor %vm497_vm10, %vm498_vm9 }
 0x345   : > { %v491_v26 = vmul.f32 0.125, %v490_v24  ;;  %v494_v27 = vsub.f32 1.0, %v493_v23 }
 0x347   : > { %v507_v30 = vmul.f32 %v1025_v7, %v491_v26  ;;  %v495_v31 = vmul.f32 %v761_v20, %v494_v27 }
 0x349   : > { %v508_v33 = vsel %vm188_vm1, %v507_v30, 0.0  ;;  %v496_v34 = vadd.f32 %v761_v20, %v495_v31 }
 0x34a   : > { %v509_v35 = vrot.slane %v508_v33, 4 }
 0x34b   : > { %v500_v37 = vsel %vm499_vm11, %v761_v20, %v496_v34 }
 0x34c   : > { %v510_v38 = vadd.f32 %v509_v35, %v508_v33  ;;  %v505_v39 = vsel %vm502_vm12, %v504_v36, %v500_v37 }
 0x34d   : > { %v506_v40 = vmul.f32 0.125, %v505_v39 }
 0x34e   : > { %v511_v41 = vrot.slane %v510_v38, 2 }
 0x34f   : > { %v515_v42 = vmul.f32 %v1027_v8, %v506_v40 }
 0x350   : > { %v512_v43 = vadd.f32 %v511_v41, %v510_v38 }
 0x351   : > { %v516_v44 = vsel %vm188_vm1, %v515_v42, 0.0 }
 0x352   : > { %v513_v45 = vrot.slane %v512_v43, 1  ;;  %v517_v46 = vrot.slane %v516_v44, 4 }
 0x354   : > { %v518_v47 = vadd.f32 %v517_v46, %v516_v44  ;;  %v514_v48 = vadd.f32 %v513_v45, %v512_v43 }
 0x356   : > { %v519_v49 = vrot.slane %v518_v47, 2  ;;  %762 = vrcp.f32 %v514_v48  ;;  %v534_v57 = vand.u32 2147483648, %v514_v48  ;;  %v532_v59 = vand.u32 2147483647, %v514_v48 }
 0x357   : > { %vm528_vm14 = vweird.f32 %v514_v48 }
 0x358   : > { %v520_v50 = vadd.f32 %v519_v49, %v518_v47  ;;  %v535_v62 = vor.u32 1.1754944e-38, %v534_v57  ;;  %vm533_vm0 = vcmp.eq.f32.partialorder %v532_v59, 8.507059e+37 }
 0x35a   : > { %v521_v51 = vrot.slane %v520_v50, 1 }
 0x35c   : > { %v763_v52 = vpop.eup %762  ;;  %v522_v53 = vadd.f32 %v521_v51, %v520_v50 }
 0x35d   : > { %v524_v54 = vmul.f32 %v763_v52, %v514_v48  ;;  %vm529_vm13 = vweird.f32 %v763_v52 }
 0x35e   : > { %764 = vrcp.f32 %v522_v53  ;;  %vm530_vm15 = vmor %vm528_vm14, %vm529_vm13  ;;  %v549_v5 = vand.u32 2147483648, %v522_v53  ;;  %v547_v10 = vand.u32 2147483647, %v522_v53  ;;  %vm543_vm3 = vweird.f32 %v522_v53 }
 0x35f   : > { %v525_v55 = vsub.f32 1.0, %v524_v54  ;;  %vm621_vm14 = vcmask (%p247_p0), 0  }
 0x360   : > { %v550_v13 = vor.u32 1.1754944e-38, %v549_v5  ;;  %vm548_vm5 = vcmp.eq.f32.partialorder %v547_v10, 8.507059e+37 }
 0x361   : > { %v526_v58 = vmul.f32 %v763_v52, %v525_v55 }
 0x363   : > { %v527_v60 = vadd.f32 %v763_v52, %v526_v58 }
 0x364   : > { %v765_v61 = vpop.eup %764 }
 0x365   : > { %v531_v63 = vsel %vm530_vm15, %v763_v52, %v527_v60  ;;  %v539_v0 = vmul.f32 %v765_v61, %v522_v53  ;;  %vm544_vm2 = vweird.f32 %v765_v61 }
 0x366   : > { %v536_v1 = vsel %vm533_vm0, %v535_v62, %v531_v63  ;;  %vm545_vm4 = vmor %vm543_vm3, %vm544_vm2 }
 0x367   : > { %v1068_v2 = vmul.f32 0.125, %v536_v1  ;;  %v540_v4 = vsub.f32 1.0, %v539_v0  ;;  %v618_v0 = vstv (%p247_p0), %s617_s3 }
 0x369   : > { %v553_v6 = vmul.f32 %v1025_v7, %v1068_v2  ;;  %v541_v9 = vmul.f32 %v765_v61, %v540_v4 }
 0x36b   : > { %v554_v11 = vsel %vm188_vm1, %v553_v6, 0.0  ;;  %v542_v12 = vadd.f32 %v765_v61, %v541_v9 }
 0x36c   : > { %555 = vadd.xlane.f32.xlu0 %v554_v11 }
 0x36d   : > { %v546_v14 = vsel %vm545_vm4, %v765_v61, %v542_v12 }
 0x36e   : > { %v551_v15 = vsel %vm548_vm5, %v550_v13, %v546_v14 }
 0x36f   : > { %v552_v16 = vmul.f32 0.125, %v551_v15 }
 0x371   : > { %v557_v17 = vmul.f32 %v1027_v8, %v552_v16 }
 0x373   : > { %v558_v18 = vsel %vm188_vm1, %v557_v17, 0.0 }
 0x374   : > { %559 = vadd.xlane.f32.xlu1 %v558_v18 }
 0x3df   : > { %v556_v19 = vpop.xlane.xlu0 %555 }
 0x3e0   : > { %766 = vrcp.f32 %v556_v19  ;;  %v572_v24 = vand.u32 2147483648, %v556_v19  ;;  %v570_v27 = vand.u32 2147483647, %v556_v19  ;;  %vm566_vm7 = vweird.f32 %v556_v19 }
 0x3e2   : > { %v573_v31 = vor.u32 1.1754944e-38, %v572_v24  ;;  %vm571_vm9 = vcmp.eq.f32.partialorder %v570_v27, 8.507059e+37 }
 0x3e6   : > { %v767_v20 = vpop.eup %766 }
 0x3e7   : > { %v562_v21 = vmul.f32 %v767_v20, %v556_v19  ;;  %v560_v22 = vpop.xlane.xlu1 %559  ;;  %vm567_vm6 = vweird.f32 %v767_v20 }
 0x3e8   : > { %768 = vrcp.f32 %v560_v22  ;;  %vm568_vm8 = vmor %vm566_vm7, %vm567_vm6  ;;  %v587_v37 = vand.u32 2147483648, %v560_v22  ;;  %v585_v39 = vand.u32 2147483647, %v560_v22  ;;  %vm581_vm11 = vweird.f32 %v560_v22 }
 0x3e9   : > { %v563_v23 = vsub.f32 1.0, %v562_v21 }
 0x3ea   : > { %v588_v41 = vor.u32 1.1754944e-38, %v587_v37  ;;  %vm586_vm13 = vcmp.eq.f32.partialorder %v585_v39, 8.507059e+37 }
 0x3eb   : > { %v564_v26 = vmul.f32 %v767_v20, %v563_v23 }
 0x3ed   : > { %v565_v28 = vadd.f32 %v767_v20, %v564_v26 }
 0x3ee   : > { %v769_v30 = vpop.eup %768 }
 0x3ef   : > { %v569_v32 = vsel %vm568_vm8, %v767_v20, %v565_v28  ;;  %v577_v33 = vmul.f32 %v769_v30, %v560_v22  ;;  %vm582_vm10 = vweird.f32 %v769_v30 }
 0x3f0   : > { %v574_v34 = vsel %vm571_vm9, %v573_v31, %v569_v32  ;;  %vm583_vm12 = vmor %vm581_vm11, %vm582_vm10 }
 0x3f1   : > { %v575_v35 = vmul.f32 0.125, %v574_v34   ;;  %v578_v36 = vsub.f32 1.0, %v577_v33 }
 0x3f3   : > { %v579_v38 = vmul.f32 %v769_v30, %v578_v36  ;;  %v1111_v10 = vmov %v575_v35  ;;  %v591_v46 = vmul.f32 (%p247_p0), %v1025_v7, %v575_v35 }
 0x3f5   : > { %v580_v40 = vadd.f32 %v769_v30, %v579_v38  ;;  %v592_v49 = vmul.f32 (%p247_p0), %v591_v46, %v1068_v2 }
 0x3f7   : > { %v584_v42 = vsel %vm583_vm12, %v769_v30, %v580_v40  ;;  %249 = sbr.rel (!%p247_p0) target bundleno = 323 (0x143), region = 71  ;;  %v593_v51 = vmul.f32 (%p247_p0), %v592_v49, %v1009_v25 }
 0x3f8   : > { %v589_v43 = vsel %vm586_vm13, %v588_v41, %v584_v42 }
 0x3f9   : > { %v590_v44 = vmul.f32 0.125, %v589_v43   ;;  %v594_v52 = vsel (%p247_p0), %vm188_vm1, %v593_v51, 0.0 }
 0x3fb   : > { %v1110_v9 = vmov %v590_v44  ;;  %v604_v45 = vmul.f32 (%p247_p0), %v1027_v8, %v590_v44 }
 0x3fd   :  { %v605_v47 = vmul.f32 %v604_v45, %v552_v16 }
 0x3ff   :  { %v606_v48 = vmul.f32 %v605_v47, %v1013_v29 }
 0x401   :  { %v607_v50 = vsel %vm188_vm1, %v606_v48, 0.0 }
 0x402   :  { %608 = vadd.xlane.f32.xlu0 %v607_v50 }
 0x40a   :  { %595 = vadd.xlane.f32.xlu0 %v594_v52 }
 0x475   :  { %v609_v53 = vpop.xlane.xlu0 %608 }
 0x476   :  { %v610_v54 = vrot.slane %v609_v53, 4 }
 0x478   :  { %v611_v55 = vadd.f32 %v610_v54, %v609_v53 }
 0x47a   :  { %v612_v57 = vrot.slane %v611_v55, 2 }
 0x47c   :  { %v613_v8 = vadd.f32 %v612_v57, %v611_v55 }
 0x47d   :  { %v596_v58 = vpop.xlane.xlu0 %595 }
 0x47e   :  { %v614_v7 = vrot.slane %v613_v8, 1  ;;  %v597_v59 = vrot.slane %v596_v58, 4 }
 0x480   :  { %v615_v29 = vadd.f32 %v614_v7, %v613_v8  ;;  %v598_v60 = vadd.f32 %v597_v59, %v596_v58 }
 0x482   :  { %v616_v61 = vmul.f32 %v615_v29, %v1021_v3  ;;  %v599_v62 = vrot.slane %v598_v60, 2 }
 0x484   :  { %v600_v63 = vadd.f32 %v599_v62, %v598_v60  ;;  %624 = vst.msk [vmem:[#allocation12] sm:$0x1] %vm621_vm14, %v616_v61  ;;  %v619_v2 = vmul.f32 %v618_v0, %v616_v61 }
 0x486   :  { %v601_v25 = vrot.slane %v600_v63, 1 }
 0x488   :  { %v602_v1 = vadd.f32 %v601_v25, %v600_v63 }
 0x48a   :  { %v603_v3 = vmul.f32 %v602_v1, %v1017_v56 }
 0x48c   :  { %623 = vst.msk [vmem:[#allocation10] sm:$0x1] %vm621_vm14, %v603_v3  ;;  %v620_v4 = vsub.f32 %v603_v3, %v619_v2 }
 0x48d   :  { %646 = dma.vmem_to_hbm [thread:$0]  %s642_s13, 16, %s644_s16, [#allocation11]  }
 0x48e   :  { %622 = vst.msk [vmem:[#allocation9] sm:$0x1] %vm621_vm14, %v620_v4  ;;  %657 = dma.vmem_to_hbm [thread:$0]  %s653_s18, 16, %s655_s21, [#allocation11]  }
 0x48f   :  { %635 = dma.vmem_to_hbm [thread:$0]  %s631_s23, 16, %s633_s26, [#allocation5]  }
 0x490   :  { %930 = dma.done.wait [#allocation5], 16  }
 0x491   :  { %931 = vsyncadd [#allocation5], 4294967280 }
 0x492   :  { %932 = dma.done.wait [#allocation11], 32  }
 0x493   :  { %933 = vsyncadd [#allocation11], 4294967264 }
 0x494   :  { %670 = vsyncpa [#allocation4], 1 }
 0x495   :  { %671 = vsyncpa [#allocation7], 1 }
 0x496   :  { %672 = vsyncpa [#allocation5], 1 }
 0x497   :  { %673 = vsyncpa [#allocation11], 1 }

</bundles_post_ra>
